<compile_context>
chip_gen: v7x
topology: tpu7x:2x2x1
jax: 0.10.0
libtpu: 0.0.40
codegen_flags: <defaults>
</compile_context>

<pallas_src>
import functools

import jax
import jax.numpy as jnp
from jax.experimental import pallas as pl
from jax.experimental.pallas import tpu as pltpu

EPS = 1e-5  # PyTorch nn.LayerNorm default


def _round_up(x, m):
    return (x + m - 1) // m * m


def _cdiv(a, b):
    return (a + b - 1) // b


def _linear_patching_kernel(x_ref, g1_ref, b1_ref, w_ref, bl_ref,
                            g2_ref, b2_ref, o_ref, *, din, e):
    """LN(Din) -> Linear(Din, E) -> LN(E) on a (tm, Din_pad) token tile.

    Feature columns >= din and output columns >= e are zero padding; the
    corresponding gamma/beta/weight/bias entries are zero, so only the
    LayerNorm statistics need explicit masking.
    """
    x = x_ref[...]                                   # (tm, Din_pad) f32
    din_pad = x.shape[-1]
    e_pad = o_ref.shape[-1]

    dmask = (jax.lax.broadcasted_iota(jnp.int32, (1, din_pad), 1) < din
             ).astype(jnp.float32)
    emask = (jax.lax.broadcasted_iota(jnp.int32, (1, e_pad), 1) < e
             ).astype(jnp.float32)

    # --- LayerNorm over patch_channels (f32) -----------------------------
    inv_din = 1.0 / din
    mu = jnp.sum(x, axis=-1, keepdims=True) * inv_din        # pad cols are 0
    xc = (x - mu) * dmask
    var = jnp.sum(xc * xc, axis=-1, keepdims=True) * inv_din
    xn = xc * jax.lax.rsqrt(var + EPS) * g1_ref[...] + b1_ref[...]

    # --- Linear: bf16 operands on the MXU, f32 accumulation --------------
    y = jnp.dot(xn.astype(jnp.bfloat16), w_ref[...],
                preferred_element_type=jnp.float32) + bl_ref[...]

    # --- LayerNorm over embed_channels (f32) ------------------------------
    inv_e = 1.0 / e
    mu2 = jnp.sum(y, axis=-1, keepdims=True) * inv_e         # pad cols are 0
    yc = (y - mu2) * emask
    var2 = jnp.sum(yc * yc, axis=-1, keepdims=True) * inv_e
    o_ref[...] = (yc * jax.lax.rsqrt(var2 + EPS) * g2_ref[...]
                  + b2_ref[...]).astype(o_ref.dtype)


def linear_patching(x, params, patch_size, *, tm_target=1024,
                    out_dtype=jnp.float32,
                    vmem_budget=40 * 1024 * 1024):
    """x: [B, C, H, W] float32 (NCHW, same as the PyTorch module).

    params are in PyTorch layout / einops (p1, p2, c) feature order:
      g1, b1: (Din,)   W: (E, Din) = nn.Linear.weight   bl: (E,)
      g2, b2: (E,)     with Din = C * patch_size**2.
    """
    B, C, H, W_ = x.shape
    p = patch_size
    h, w = H // p, W_ // p
    N = h * w
    Din = C * p * p
    g1, b1, Wlin, bl, g2, b2 = params
    E = Wlin.shape[0]

    # ---- patch extraction, feature order (c, p1, p2) ---------------------
    # The transpose keeps the innermost (p2) axis in place; the feature
    # permutation is folded into g1 / b1 / the weight rows below, so the
    # result equals the einops (p1, p2, c) pipeline exactly.
    # allow_input_fusion lets XLA fuse this transpose/pad into the tokens
    # input DMA instead of a separate HBM round trip.
    # TODO(synk): fully fuse patchify into the kernel via a (B, h) grid and
    # an in-VMEM swizzle to guarantee the HBM round trip is eliminated.
    xr = x.reshape(B, C, h, p, w, p)
    tokens = jnp.transpose(xr, (0, 2, 4, 1, 3, 5)).reshape(B * N, Din)

    # permute params from einops feature order (p1, p2, c) -> (c, p1, p2)
    def perm_vec(v):
        return v.reshape(p, p, C).transpose(2, 0, 1).reshape(Din)

    g1p = perm_vec(g1)
    b1p = perm_vec(b1)
    Wtp = Wlin.T.reshape(p, p, C, E).transpose(2, 0, 1, 3).reshape(Din, E)

    # ---- lane-dense padding + per-generation-safe tile sizing ------------
    T = B * N
    Din_p = _round_up(Din, 128)
    E_p = _round_up(E, 128)
    out_bytes = jnp.dtype(out_dtype).itemsize

    # VMEM footprint: single-buffered weight + param rows, double-buffered
    # token / output tiles, plus slack for compiler internal scratch.
    fixed = Din_p * E_p * 2 + (2 * Din_p + 3 * E_p) * 4 + (1 << 20)
    per_row = 2 * (Din_p * 4 + E_p * out_bytes)
    tm_budget = max(8, (vmem_budget - fixed) // per_row)
    tm_target = int(min(tm_target, tm_budget, _round_up(T, 8)))

    # Minimise token-padding waste and keep an even (>1) step count so both
    # v7x TensorCores get work from the "parallel" grid axis.
    n_steps = _cdiv(T, tm_target)
    if n_steps > 1 and n_steps % 2 == 1:
        n_steps += 1
    tm = _round_up(_cdiv(T, n_steps), 8)
    T_p = n_steps * tm

    tokens = jnp.pad(tokens, ((0, T_p - T), (0, Din_p - Din)))
    g1p = jnp.pad(g1p, (0, Din_p - Din)).reshape(1, Din_p)
    b1p = jnp.pad(b1p, (0, Din_p - Din)).reshape(1, Din_p)
    Wtp = jnp.pad(Wtp, ((0, Din_p - Din), (0, E_p - E))).astype(jnp.bfloat16)
    blp = jnp.pad(bl, (0, E_p - E)).reshape(1, E_p)
    g2p = jnp.pad(g2, (0, E_p - E)).reshape(1, E_p)
    b2p = jnp.pad(b2, (0, E_p - E)).reshape(1, E_p)

    vmem_need = fixed + per_row * tm
    vmem_limit = int(max(32 << 20, min(vmem_need + (4 << 20), 64 << 20)))

    kernel = functools.partial(_linear_patching_kernel, din=Din, e=E)

    const = pl.Buffered(1)  # grid-invariant operands: no double buffering

    out = pl.pallas_call(
        kernel,
        out_shape=jax.ShapeDtypeStruct((T_p, E_p), out_dtype),
        grid_spec=pltpu.PrefetchScalarGridSpec(
            num_scalar_prefetch=0,
            grid=(n_steps,),
            in_specs=[
                pl.BlockSpec((tm, Din_p), lambda i: (i, 0)),    # tokens
                pl.BlockSpec((1, Din_p), lambda i: (0, 0),      # ln1 gamma
                             pipeline_mode=const),
                pl.BlockSpec((1, Din_p), lambda i: (0, 0),      # ln1 beta
                             pipeline_mode=const),
                pl.BlockSpec((Din_p, E_p), lambda i: (0, 0),    # W^T (bf16)
                             pipeline_mode=const),
                pl.BlockSpec((1, E_p), lambda i: (0, 0),        # linear bias
                             pipeline_mode=const),
                pl.BlockSpec((1, E_p), lambda i: (0, 0),        # ln2 gamma
                             pipeline_mode=const),
                pl.BlockSpec((1, E_p), lambda i: (0, 0),        # ln2 beta
                             pipeline_mode=const),
            ],
            out_specs=pl.BlockSpec((tm, E_p), lambda i: (i, 0)),
        ),
        compiler_params=pltpu.CompilerParams(
            dimension_semantics=("parallel",),
            allow_input_fusion=[True, False, False, False, False, False, False],
            vmem_limit_bytes=vmem_limit),
    )(tokens, g1p, b1p, Wtp, blp, g2p, b2p)

    return out[:T, :E].reshape(B, N, E)


def make_params(key, channels, embed_channels, patch_size):
    """Parameters in PyTorch layout (einops (p1, p2, c) feature order)."""
    Din = channels * patch_size * patch_size
    E = embed_channels
    k1, k2, k3, k4, k5, k6 = jax.random.split(key, 6)
    g1 = 1.0 + 0.1 * jax.random.normal(k1, (Din,), jnp.float32)
    b1 = 0.1 * jax.random.normal(k2, (Din,), jnp.float32)
    Wlin = 0.02 * jax.random.normal(k3, (E, Din), jnp.float32)  # (E, Din)
    bl = 0.02 * jax.random.normal(k4, (E,), jnp.float32)
    g2 = 1.0 + 0.1 * jax.random.normal(k5, (E,), jnp.float32)
    b2 = 0.1 * jax.random.normal(k6, (E,), jnp.float32)
    return (g1, b1, Wlin, bl, g2, b2)


def _reference(x, params, patch_size, *, matmul_dtype=jnp.float32):
    """Pure-JAX reference mirroring the PyTorch forward (einops order)."""
    B, C, H, W_ = x.shape
    p = patch_size
    h, w = H // p, W_ // p
    xr = x.reshape(B, C, h, p, w, p)
    xr = jnp.transpose(xr, (0, 2, 4, 3, 5, 1)).reshape(B, h * w, C * p * p)
    g1, b1, Wlin, bl, g2, b2 = params

    def ln(z, g, b):
        mu = jnp.mean(z, axis=-1, keepdims=True)
        var = jnp.mean((z - mu) ** 2, axis=-1, keepdims=True)
        return (z - mu) * jax.lax.rsqrt(var + EPS) * g + b

    y = ln(xr, g1, b1)
    y = jnp.dot(y.astype(matmul_dtype), Wlin.T.astype(matmul_dtype),
                preferred_element_type=jnp.float32) + bl
    return ln(y, g2, b2)


if __name__ == "__main__":
    key = jax.random.PRNGKey(0)
    kx, kp = jax.random.split(key)

    B, C, H, W = 2, 4, 16, 16
    patch_size = 4
    embed_channels = 32

    x = jax.random.normal(kx, (B, C, H, W), jnp.float32)
    params = make_params(kp, C, embed_channels, patch_size)

    out = jax.block_until_ready(linear_patching(x, params, patch_size))

    N = (H // patch_size) * (W // patch_size)
    assert out.shape == (B, N, embed_channels)

    # Tight check against a reference that mirrors the kernel's bf16 matmul.
    ref_bf16 = _reference(x, params, patch_size, matmul_dtype=jnp.bfloat16)
    assert jnp.allclose(out, ref_bf16, atol=5e-3, rtol=5e-3)

    # Looser check against the exact f32 PyTorch-faithful forward
    # (difference is only the bf16 rounding of the MXU operands).
    ref_f32 = _reference(x, params, patch_size, matmul_dtype=jnp.float32)
    assert jnp.allclose(out, ref_f32, atol=5e-2, rtol=5e-2)

    print("KERNEL_OK")
</pallas_src>

<mosaic_0001>
module attributes {stable_mosaic.version = 11 : i64} {
  func.func @_linear_patching_kernel(%arg0: i32, %arg1: memref<32x128xf32, #tpu.memory_space<vmem>>, %arg2: memref<1x128xf32, #tpu.memory_space<vmem>>, %arg3: memref<1x128xf32, #tpu.memory_space<vmem>>, %arg4: memref<128x128xbf16, #tpu.memory_space<vmem>>, %arg5: memref<1x128xf32, #tpu.memory_space<vmem>>, %arg6: memref<1x128xf32, #tpu.memory_space<vmem>>, %arg7: memref<1x128xf32, #tpu.memory_space<vmem>>, %arg8: memref<32x128xf32, #tpu.memory_space<vmem>>) attributes {dimension_semantics = [#tpu.dimension_semantics<parallel>], iteration_bounds = array<i64: 1>, scalar_prefetch = 0 : i64, scratch_operands = 0 : i64, tpu.core_type = #tpu.core_type<tc>, window_params = [{transform_indices = @transform_0, window_bounds = array<i64: 32, 128>}, {pipeline_mode = #tpu.pipeline_mode<synchronous>, transform_indices = @transform_1, window_bounds = array<i64: 1, 128>}, {pipeline_mode = #tpu.pipeline_mode<synchronous>, transform_indices = @transform_2, window_bounds = array<i64: 1, 128>}, {pipeline_mode = #tpu.pipeline_mode<synchronous>, transform_indices = @transform_3, window_bounds = array<i64: 128, 128>}, {pipeline_mode = #tpu.pipeline_mode<synchronous>, transform_indices = @transform_4, window_bounds = array<i64: 1, 128>}, {pipeline_mode = #tpu.pipeline_mode<synchronous>, transform_indices = @transform_5, window_bounds = array<i64: 1, 128>}, {pipeline_mode = #tpu.pipeline_mode<synchronous>, transform_indices = @transform_6, window_bounds = array<i64: 1, 128>}, {transform_indices = @transform_7, window_bounds = array<i64: 32, 128>}]} {
    %c0 = arith.constant 0 : index
    %c0_0 = arith.constant 0 : index
    %0 = vector.load %arg1[%c0, %c0_0] : memref<32x128xf32, #tpu.memory_space<vmem>>, vector<32x128xf32>
    %1 = tpu.iota {dimensions = array<i32: 1>} : vector<1x128xi32>
    %c64_i32 = arith.constant 64 : i32
    %2 = vector.broadcast %c64_i32 : i32 to vector<1x128xi32>
    %3 = arith.cmpi slt, %1, %2 : vector<1x128xi32>
    %4 = arith.extui %3 : vector<1x128xi1> to vector<1x128xi32>
    %5 = arith.sitofp %4 : vector<1x128xi32> to vector<1x128xf32>
    %6 = tpu.iota {dimensions = array<i32: 1>} : vector<1x128xi32>
    %c32_i32 = arith.constant 32 : i32
    %7 = vector.broadcast %c32_i32 : i32 to vector<1x128xi32>
    %8 = arith.cmpi slt, %6, %7 : vector<1x128xi32>
    %9 = arith.extui %8 : vector<1x128xi1> to vector<1x128xi32>
    %10 = arith.sitofp %9 : vector<1x128xi32> to vector<1x128xf32>
    %cst = arith.constant dense<0.000000e+00> : vector<32xf32>
    %11 = vector.multi_reduction <add>, %0, %cst [1] : vector<32x128xf32> to vector<32xf32>
    %12 = vector.shape_cast %11 : vector<32xf32> to vector<32x1xf32>
    %cst_1 = arith.constant 1.562500e-02 : f32
    %13 = vector.broadcast %cst_1 : f32 to vector<32x1xf32>
    %14 = arith.mulf %12, %13 : vector<32x1xf32>
    %15 = vector.broadcast %14 : vector<32x1xf32> to vector<32x128xf32>
    %16 = arith.subf %0, %15 : vector<32x128xf32>
    %17 = vector.broadcast %5 : vector<1x128xf32> to vector<32x128xf32>
    %18 = arith.mulf %16, %17 : vector<32x128xf32>
    %19 = arith.mulf %18, %18 : vector<32x128xf32>
    %cst_2 = arith.constant dense<0.000000e+00> : vector<32xf32>
    %20 = vector.multi_reduction <add>, %19, %cst_2 [1] : vector<32x128xf32> to vector<32xf32>
    %21 = vector.shape_cast %20 : vector<32xf32> to vector<32x1xf32>
    %cst_3 = arith.constant 1.562500e-02 : f32
    %22 = vector.broadcast %cst_3 : f32 to vector<32x1xf32>
    %23 = arith.mulf %21, %22 : vector<32x1xf32>
    %cst_4 = arith.constant 9.99999974E-6 : f32
    %24 = vector.broadcast %cst_4 : f32 to vector<32x1xf32>
    %25 = arith.addf %23, %24 : vector<32x1xf32>
    %26 = math.rsqrt %25 : vector<32x1xf32>
    %27 = vector.broadcast %26 : vector<32x1xf32> to vector<32x128xf32>
    %28 = arith.mulf %18, %27 : vector<32x128xf32>
    %c0_5 = arith.constant 0 : index
    %c0_6 = arith.constant 0 : index
    %29 = vector.load %arg2[%c0_5, %c0_6] : memref<1x128xf32, #tpu.memory_space<vmem>>, vector<1x128xf32>
    %30 = vector.broadcast %29 : vector<1x128xf32> to vector<32x128xf32>
    %31 = arith.mulf %28, %30 : vector<32x128xf32>
    %c0_7 = arith.constant 0 : index
    %c0_8 = arith.constant 0 : index
    %32 = vector.load %arg3[%c0_7, %c0_8] : memref<1x128xf32, #tpu.memory_space<vmem>>, vector<1x128xf32>
    %33 = vector.broadcast %32 : vector<1x128xf32> to vector<32x128xf32>
    %34 = arith.addf %31, %33 : vector<32x128xf32>
    %35 = arith.truncf %34 : vector<32x128xf32> to vector<32x128xbf16>
    %c0_9 = arith.constant 0 : index
    %c0_10 = arith.constant 0 : index
    %36 = vector.load %arg4[%c0_9, %c0_10] : memref<128x128xbf16, #tpu.memory_space<vmem>>, vector<128x128xbf16>
    %cst_11 = arith.constant dense<0.000000e+00> : vector<32x128xf32>
    %37 = tpu.matmul %35, %36, %cst_11 {dimension_numbers = #tpu.dot_dimension_numbers<[1], [0], [0], [1], [0, 0, 1, 1], [], []>} : vector<32x128xbf16>, vector<128x128xbf16>, vector<32x128xf32> -> vector<32x128xf32>
    %c0_12 = arith.constant 0 : index
    %c0_13 = arith.constant 0 : index
    %38 = vector.load %arg5[%c0_12, %c0_13] : memref<1x128xf32, #tpu.memory_space<vmem>>, vector<1x128xf32>
    %39 = vector.broadcast %38 : vector<1x128xf32> to vector<32x128xf32>
    %40 = arith.addf %37, %39 : vector<32x128xf32>
    %cst_14 = arith.constant dense<0.000000e+00> : vector<32xf32>
    %41 = vector.multi_reduction <add>, %40, %cst_14 [1] : vector<32x128xf32> to vector<32xf32>
    %42 = vector.shape_cast %41 : vector<32xf32> to vector<32x1xf32>
    %cst_15 = arith.constant 3.125000e-02 : f32
    %43 = vector.broadcast %cst_15 : f32 to vector<32x1xf32>
    %44 = arith.mulf %42, %43 : vector<32x1xf32>
    %45 = vector.broadcast %44 : vector<32x1xf32> to vector<32x128xf32>
    %46 = arith.subf %40, %45 : vector<32x128xf32>
    %47 = vector.broadcast %10 : vector<1x128xf32> to vector<32x128xf32>
    %48 = arith.mulf %46, %47 : vector<32x128xf32>
    %49 = arith.mulf %48, %48 : vector<32x128xf32>
    %cst_16 = arith.constant dense<0.000000e+00> : vector<32xf32>
    %50 = vector.multi_reduction <add>, %49, %cst_16 [1] : vector<32x128xf32> to vector<32xf32>
    %51 = vector.shape_cast %50 : vector<32xf32> to vector<32x1xf32>
    %cst_17 = arith.constant 3.125000e-02 : f32
    %52 = vector.broadcast %cst_17 : f32 to vector<32x1xf32>
    %53 = arith.mulf %51, %52 : vector<32x1xf32>
    %cst_18 = arith.constant 9.99999974E-6 : f32
    %54 = vector.broadcast %cst_18 : f32 to vector<32x1xf32>
    %55 = arith.addf %53, %54 : vector<32x1xf32>
    %56 = math.rsqrt %55 : vector<32x1xf32>
    %57 = vector.broadcast %56 : vector<32x1xf32> to vector<32x128xf32>
    %58 = arith.mulf %48, %57 : vector<32x128xf32>
    %c0_19 = arith.constant 0 : index
    %c0_20 = arith.constant 0 : index
    %59 = vector.load %arg6[%c0_19, %c0_20] : memref<1x128xf32, #tpu.memory_space<vmem>>, vector<1x128xf32>
    %60 = vector.broadcast %59 : vector<1x128xf32> to vector<32x128xf32>
    %61 = arith.mulf %58, %60 : vector<32x128xf32>
    %c0_21 = arith.constant 0 : index
    %c0_22 = arith.constant 0 : index
    %62 = vector.load %arg7[%c0_21, %c0_22] : memref<1x128xf32, #tpu.memory_space<vmem>>, vector<1x128xf32>
    %63 = vector.broadcast %62 : vector<1x128xf32> to vector<32x128xf32>
    %64 = arith.addf %61, %63 : vector<32x128xf32>
    %c0_23 = arith.constant 0 : index
    %c0_24 = arith.constant 0 : index
    %65 = vector.load %arg8[%c0_23, %c0_24] : memref<32x128xf32, #tpu.memory_space<vmem>>, vector<32x128xf32>
    tpu.vector_store %arg8[%c0_23, %c0_24], %64 {strides = array<i32>} : memref<32x128xf32, #tpu.memory_space<vmem>>, vector<32x128xf32>,
    return
  }
  func.func @transform_0(%arg0: i32) -> (i32, i32) {
    %c0_i32 = arith.constant 0 : i32
    %c0_i32_0 = arith.constant 0 : i32
    return %arg0, %c0_i32 : i32, i32
  }
  func.func @transform_1(%arg0: i32) -> (i32, i32) {
    %c0_i32 = arith.constant 0 : i32
    %c0_i32_0 = arith.constant 0 : i32
    %c0_i32_1 = arith.constant 0 : i32
    return %c0_i32, %c0_i32_0 : i32, i32
  }
  func.func @transform_2(%arg0: i32) -> (i32, i32) {
    %c0_i32 = arith.constant 0 : i32
    %c0_i32_0 = arith.constant 0 : i32
    %c0_i32_1 = arith.constant 0 : i32
    return %c0_i32, %c0_i32_0 : i32, i32
  }
  func.func @transform_3(%arg0: i32) -> (i32, i32) {
    %c0_i32 = arith.constant 0 : i32
    %c0_i32_0 = arith.constant 0 : i32
    %c0_i32_1 = arith.constant 0 : i32
    return %c0_i32, %c0_i32_0 : i32, i32
  }
  func.func @transform_4(%arg0: i32) -> (i32, i32) {
    %c0_i32 = arith.constant 0 : i32
    %c0_i32_0 = arith.constant 0 : i32
    %c0_i32_1 = arith.constant 0 : i32
    return %c0_i32, %c0_i32_0 : i32, i32
  }
  func.func @transform_5(%arg0: i32) -> (i32, i32) {
    %c0_i32 = arith.constant 0 : i32
    %c0_i32_0 = arith.constant 0 : i32
    %c0_i32_1 = arith.constant 0 : i32
    return %c0_i32, %c0_i32_0 : i32, i32
  }
  func.func @transform_6(%arg0: i32) -> (i32, i32) {
    %c0_i32 = arith.constant 0 : i32
    %c0_i32_0 = arith.constant 0 : i32
    %c0_i32_1 = arith.constant 0 : i32
    return %c0_i32, %c0_i32_0 : i32, i32
  }
  func.func @transform_7(%arg0: i32) -> (i32, i32) {
    %c0_i32 = arith.constant 0 : i32
    %c0_i32_0 = arith.constant 0 : i32
    return %arg0, %c0_i32 : i32, i32
  }
}

</mosaic_0001>

<bundles_post_ra>
// kernel: tpu_custom_call.1
= control target key start
LH: loop header
LB: loop body
LE: loop exit
PB: predicated region body
PF: predicated region fallthrough
CT: control target
= control target key end

     0   :  { %12 = vsyncpa [#allocation3], 0  ;;  %s612_s0 = inlined_call_operand.hbm [shape: f32[32,128], index: 0, kind: input, shape index: {}]   ;;  %s613_s1 = inlined_call_operand.vmem [shape: f32[1,128], index: 1, kind: input, shape index: {}]   ;;  %s614_s2 = inlined_call_operand.vmem [shape: f32[1,128], index: 2, kind: input, shape index: {}]   ;;  %s615_s3 = inlined_call_operand.hbm [shape: bf16[128,128], index: 3, kind: input, shape index: {}]   ;;  %s616_s4 = inlined_call_operand.vmem [shape: f32[1,128], index: 4, kind: input, shape index: {}]   ;;  %s617_s5 = inlined_call_operand.vmem [shape: f32[1,128], index: 5, kind: input, shape index: {}]   ;;  %s618_s6 = inlined_call_operand.vmem [shape: f32[1,128], index: 6, kind: input, shape index: {}]   ;;  %s619_s7 = inlined_call_operand.hbm [shape: f32[32,128], index: 7, kind: output, shape index: {}]  }
   0x1   :  { %13 = vsyncpa [#allocation6], 0 }
   0x2   :  { %14 = vsyncpa [#allocation4], 0  ;;  %s501_s24 = smov [#allocation2]   ;;  %s429_s28 = scalar_lea.hbm %s612_s0, 512 }
   0x3   :  { %s20_s25 = sshll.u32 %s501_s24, 4  ;;  %p430_p0 = scmp.ne.s32.totalorder %s612_s0, %s429_s28  ;;  %s21_s25 = int_to_ptr.vmem [resolvable:$true] %s20_s25 }
   0x4   :  { %p433_p1 = scmp.lt.u32.totalorder %s429_s28, %s612_s0 }
   0x6   :  { %p435_p2 = pnand %p433_p1, %p430_p0 }
   0x8   :  { %438 = shalt.err (!%p435_p2)
}
   0x9   :  { %s439_s10 = scalar_lea.vmem %s21_s25, 512  ;;  %p444_p4 = scmp.lt.s32.totalorder %s21_s25, %s21_s25 }
   0xa   :  { %p440_p3 = scmp.ne.s32.totalorder %s21_s25, %s439_s10  ;;  %p445_p5 = scmp.lt.s32.totalorder %s439_s10, %s439_s10 }
   0xc   :  { %p446_p6 = por %p445_p5, %p444_p4 }
   0xe   :  { %p447_p7 = pnand %p446_p6, %p440_p3 }
  0x10   :  { %450 = shalt.err (!%p447_p7)
}
  0x11   :  { %s502_s11 = smov 128   ;;  %s503_s12 = smov 8  }
  0x12   :  { %26 = dma.hbm_to_vmem [thread:$0]  %s612_s0, 512, %s21_s25, [#allocation3], %s502_s11, %s502_s11, %s503_s12  }
  0x13   :  { %s504_s15 = smov [#allocation5]   ;;  %s451_s19 = scalar_lea.hbm %s615_s3, 1024 }
  0x14   :  { %s36_s16 = sshll.u32 %s504_s15, 4  ;;  %p452_p8 = scmp.ne.s32.totalorder %s615_s3, %s451_s19  ;;  %s37_s16 = int_to_ptr.vmem [resolvable:$true] %s36_s16 }
  0x15   :  { %p455_p9 = scmp.lt.u32.totalorder %s451_s19, %s615_s3 }
  0x17   :  { %p457_p10 = pnand %p455_p9, %p452_p8 }
  0x19   :  { %460 = shalt.err (!%p457_p10)
}
  0x1a   :  { %s461_s24 = scalar_lea.vmem %s37_s16, 1024  ;;  %p466_p12 = scmp.lt.s32.totalorder %s37_s16, %s37_s16 }
  0x1b   :  { %p462_p11 = scmp.ne.s32.totalorder %s37_s16, %s461_s24  ;;  %p467_p13 = scmp.lt.s32.totalorder %s461_s24, %s461_s24 }
  0x1d   :  { %p468_p0 = por %p467_p13, %p466_p12 }
  0x1f   :  { %p469_p1 = pnand %p468_p0, %p462_p11 }
  0x21   :  { %472 = shalt.err (!%p469_p1)
}
  0x22   :  { %s505_s0 = smov 64   ;;  %s506_s25 = smov 4  }
  0x23   :  { %42 = dma.hbm_to_vmem [thread:$0]  %s615_s3, 1024, %s37_s16, [#allocation6], %s505_s0, %s505_s0, %s506_s25  }
  0x24   :  { %495 = dma.done.wait [#allocation3], 512  }
  0x25   :  { %496 = vsyncadd [#allocation3], 4294966784 }
  0x26   :  { %497 = dma.done.wait [#allocation6], 1024  }
  0x27   :  { %498 = vsyncadd [#allocation6], 4294966272  ;;  %v56_v0 = vld [vmem:[#allocation2] sm:$0xff]  ;;  %v58_v1 = vld [vmem:[#allocation2 + $0x10] sm:$0xff]  ;;  %v60_v5 = vlaneseq  ;;  %v507_v11 = vmov 0.0   ;;  %s508_s13 = smov [#allocation7]  }
  0x28   :  { %v57_v2 = vld [vmem:[#allocation2 + $0x8] sm:$0xff]  ;;  %68 = vadd.xlane.f32.xlu0 %v56_v0  ;;  %72 = vadd.xlane.f32.xlu1 %v58_v1  ;;  %v59_v3 = vld [vmem:[#allocation2 + $0x18] sm:$0xff]  ;;  %v405_v4 = vld [vmem:[#allocation5] sm:$0xff]   ;;  %s339_s14 = sshll.u32 %s508_s13, 4  ;;  %s340_s14 = int_to_ptr.vmem [resolvable:$true] %s339_s14 }
  0x29   :  { %377 = vmatprep.subr.bf16.mxu0 %v405_v4  ;;  %v576_v6 = vand.u32 127, %v60_v5  ;;  %v406_v29 = vld [vmem:[#allocation5 + $0x8] sm:$0xff]   ;;  %v407_v30 = vld [vmem:[#allocation5 + $0x10] sm:$0xff]   ;;  %v408_v31 = vld [vmem:[#allocation5 + $0x18] sm:$0xff]   ;;  %p478_p3 = scmp.lt.s32.totalorder %s340_s14, %s340_s14 }
  0x2a   :  { %378 = vmatpush3.bf16.msra.mxu0 %v405_v4  ;;  %v409_v32 = vld [vmem:[#allocation5 + $0x20] sm:$0xff]   ;;  %v410_v33 = vld [vmem:[#allocation5 + $0x28] sm:$0xff]   ;;  %v411_v34 = vld [vmem:[#allocation5 + $0x30] sm:$0xff]  }
  0x2b   :  { %vm62_vm0 = vcmp.lt.s32.totalorder %v576_v6, 64  ;;  %379 = vmatprep.subr.bf16.mxu0 %v406_v29  ;;  %v412_v35 = vld [vmem:[#allocation5 + $0x38] sm:$0xff]   ;;  %v354_v50 = vld [vmem:[%s613_s1] ss:$0 sm:$0xff]  ;;  %vm65_vm1 = vcmp.lt.s32.totalorder %v576_v6, 32 }
  0x2c   :  { %70 = vadd.xlane.f32.xlu0 %v57_v2  ;;  %74 = vadd.xlane.f32.xlu1 %v59_v3  ;;  %v352_v12 = vsel %vm62_vm0, 1.0, %v507_v11  ;;  %v355_v55 = vld [vmem:[%s614_s2] ss:$0 sm:$0xff] }
  0x2d   :  { %v356_v4 = vld [vmem:[%s616_s4] ss:$0 sm:$0xff] }
  0x2e   :  { %380 = vmatpush3.bf16.msra.mxu0 %v406_v29 }
  0x2f   :  { %381 = vmatprep.subr.bf16.mxu0 %v407_v30 }
  0x32   :  { %382 = vmatpush3.bf16.msra.mxu0 %v407_v30 }
  0x33   :  { %383 = vmatprep.subr.bf16.mxu0 %v408_v31 }
  0x36   :  { %384 = vmatpush3.bf16.msra.mxu0 %v408_v31 }
  0x37   :  { %385 = vmatprep.subr.bf16.mxu0 %v409_v32 }
  0x3a   :  { %386 = vmatpush3.bf16.msra.mxu0 %v409_v32 }
  0x3b   :  { %387 = vmatprep.subr.bf16.mxu0 %v410_v33 }
  0x3e   :  { %388 = vmatpush3.bf16.msra.mxu0 %v410_v33 }
  0x3f   :  { %389 = vmatprep.subr.bf16.mxu0 %v411_v34 }
  0x42   :  { %390 = vmatpush3.bf16.msra.mxu0 %v411_v34 }
  0x43   :  { %391 = vmatprep.subr.bf16.mxu0 %v412_v35 }
  0x46   :  { %392 = vmatpush3.bf16.msra.mxu0 %v412_v35 }
  0xb5   :  { %v69_v7 = vpop.xlane.xlu0 %68  ;;  %v73_v8 = vpop.xlane.xlu1 %72 }
  0xb6   :  { %v76_v9 = vmul.f32 0.015625, %v69_v7  ;;  %v78_v10 = vmul.f32 0.015625, %v73_v8 }
  0xb8   :  { %v80_v13 = vsub.f32 %v56_v0, %v76_v9  ;;  %v82_v14 = vsub.f32 %v58_v1, %v78_v10 }
  0xb9   :  { %v71_v15 = vpop.xlane.xlu0 %70  ;;  %v75_v16 = vpop.xlane.xlu1 %74 }
  0xba   :  { %v77_v17 = vmul.f32 0.015625, %v71_v15  ;;  %v79_v18 = vmul.f32 0.015625, %v75_v16  ;;  %v84_v19 = vmul.f32 %v352_v12, %v80_v13  ;;  %v86_v20 = vmul.f32 %v352_v12, %v82_v14 }
  0xbc   :  { %v81_v21 = vsub.f32 %v57_v2, %v77_v17  ;;  %v83_v22 = vsub.f32 %v59_v3, %v79_v18  ;;  %v88_v23 = vmul.f32 %v84_v19, %v84_v19  ;;  %v90_v24 = vmul.f32 %v86_v20, %v86_v20 }
  0xbd   :  { %v353_v18 = vsel %vm65_vm1, 1.0, %v507_v11 }
  0xbe   :  { %92 = vadd.xlane.f32.xlu0 %v88_v23  ;;  %v85_v25 = vmul.f32 %v352_v12, %v81_v21  ;;  %v87_v26 = vmul.f32 %v352_v12, %v83_v22 }
  0xc0   :  { %v89_v27 = vmul.f32 %v85_v25, %v85_v25  ;;  %v91_v28 = vmul.f32 %v87_v26, %v87_v26 }
  0xc2   :  { %96 = vadd.xlane.f32.xlu0 %v90_v24  ;;  %94 = vadd.xlane.f32.xlu1 %v89_v27 }
  0xc6   :  { %98 = vadd.xlane.f32.xlu1 %v91_v28 }
 0x14b   :  { %v93_v36 = vpop.xlane.xlu0 %92 }
 0x14c   :  { %v100_v37 = vmul.f32 0.015625, %v93_v36 }
 0x14e   :  { %v104_v38 = vadd.f32 1e-05, %v100_v37 }
 0x14f   :  { %v95_v39 = vpop.xlane.xlu1 %94  ;;  %v97_v40 = vpop.xlane.xlu0 %96 }
 0x150   :  { %413 = vrsqrt.f32 %v104_v38  ;;  %v101_v41 = vmul.f32 0.015625, %v95_v39  ;;  %v102_v42 = vmul.f32 0.015625, %v97_v40 }
 0x152   :  { %v105_v43 = vadd.f32 1e-05, %v101_v41  ;;  %v106_v44 = vadd.f32 1e-05, %v102_v42 }
 0x153   :  { %v99_v45 = vpop.xlane.xlu1 %98 }
 0x154   :  { %415 = vrsqrt.f32 %v105_v43  ;;  %v103_v46 = vmul.f32 0.015625, %v99_v45 }
 0x155   :  { %417 = vrsqrt.f32 %v106_v44 }
 0x156   :  { %v107_v47 = vadd.f32 1e-05, %v103_v46 }
 0x158   :  { %419 = vrsqrt.f32 %v107_v47  ;;  %v365_v47 = vld [vmem:[%s617_s5] ss:$0 sm:$0xff]  ;;  %s473_s5 = scalar_lea.vmem %s340_s14, 512 }
 0x159   :  { %p474_p2 = scmp.ne.s32.totalorder %s340_s14, %s473_s5  ;;  %p479_p4 = scmp.lt.s32.totalorder %s473_s5, %s473_s5 }
 0x15a   :  { %v414_v48 = vpop.eup %413 }
 0x15b   :  { %v112_v49 = vmul.f32 %v414_v48, %v84_v19  ;;  %p480_p5 = por %p479_p4, %p478_p3 }
 0x15d   :  { %v123_v54 = vmul.f32 %v354_v50, %v112_v49  ;;  %p481_p6 = pnand %p480_p5, %p474_p2 }
 0x15e   :  { %v416_v51 = vpop.eup %415 }
 0x15f   :  { %v418_v52 = vpop.eup %417  ;;  %v113_v53 = vmul.f32 %v416_v51, %v85_v25  ;;  %v134_v59 = vadd.f32 %v355_v55, %v123_v54 }
 0x160   :  { %v114_v56 = vmul.f32 %v418_v52, %v86_v20 }
 0x161   :  { %v124_v57 = vmul.f32 %v354_v50, %v113_v53 }
 0x162   :  { %v420_v58 = vpop.eup %419  ;;  %v125_v62 = vmul.f32 %v354_v50, %v114_v56 }
 0x163   :  { %v135_v60 = vadd.f32 %v355_v55, %v124_v57  ;;  %v115_v61 = vmul.f32 %v420_v58, %v87_v26 }
 0x164   :  { %v136_v1 = vadd.f32 %v355_v55, %v125_v62 }
 0x165   :  { %v138_v63 = vpack.c.bf16 %v135_v60, %v134_v59  ;;  %v126_v0 = vmul.f32 %v354_v50, %v115_v61  ;;  %v366_v50 = vld [vmem:[%s618_s6] ss:$0 sm:$0xff] }
 0x167   :  { %393 = vmatprep.mubr.bf16.mxu0 %v138_v63  ;;  %v137_v2 = vadd.f32 %v355_v55, %v126_v0 }
 0x169   :  { %v139_v3 = vpack.c.bf16 %v137_v2, %v136_v1 }
 0x16b   :  { %394 = vmatmul.mubr.bf16.vlgmr.msra.gmra.mrb[0].mxu0 %v139_v3 }
 0x23e   :  { %v395_v5 = vpop.f32.mrb[0].mxu0 }
 0x23f   :  { %v245_v7 = vpop.f32.mrb[1].mxu0  ;;  %v254_v13 = vadd.f32 %v395_v5, %v356_v4 }
 0x240   :  { %v246_v8 = vadd.f32 %v356_v4, %v245_v7  ;;  %v396_v9 = vpop.f32.mrb[2].mxu0 }
 0x241   :  { %v248_v10 = vpop.f32.mrb[3].mxu0  ;;  %v257_v14 = vadd.f32 %v396_v9, %v356_v4 }
 0x242   :  { %v249_v12 = vadd.f32 %v356_v4, %v248_v10  ;;  %260 = vadd.xlane.f32.xlu0 %v246_v8 }
 0x244   :  { %262 = vadd.xlane.f32.xlu1 %v249_v12 }
 0x246   :  { %264 = vadd.xlane.f32.xlu0 %v254_v13 }
 0x248   :  { %266 = vadd.xlane.f32.xlu1 %v257_v14 }
 0x2cf   :  { %v261_v15 = vpop.xlane.xlu0 %260 }
 0x2d0   :  { %v268_v16 = vmul.f32 0.03125, %v261_v15 }
 0x2d1   :  { %v263_v17 = vpop.xlane.xlu1 %262 }
 0x2d2   :  { %v272_v19 = vsub.f32 %v246_v8, %v268_v16  ;;  %v269_v20 = vmul.f32 0.03125, %v263_v17 }
 0x2d3   :  { %v265_v21 = vpop.xlane.xlu0 %264 }
 0x2d4   :  { %v273_v22 = vsub.f32 %v249_v12, %v269_v20  ;;  %v270_v23 = vmul.f32 0.03125, %v265_v21  ;;  %v276_v24 = vmul.f32 %v353_v18, %v272_v19 }
 0x2d5   :  { %v267_v25 = vpop.xlane.xlu1 %266 }
 0x2d6   :  { %v274_v26 = vsub.f32 %v254_v13, %v270_v23  ;;  %v271_v27 = vmul.f32 0.03125, %v267_v25  ;;  %v280_v28 = vmul.f32 %v276_v24, %v276_v24  ;;  %v277_v29 = vmul.f32 %v353_v18, %v273_v22 }
 0x2d8   :  { %v275_v30 = vsub.f32 %v257_v14, %v271_v27  ;;  %284 = vadd.xlane.f32.xlu0 %v280_v28  ;;  %v281_v31 = vmul.f32 %v277_v29, %v277_v29  ;;  %v278_v6 = vmul.f32 %v353_v18, %v274_v26 }
 0x2da   :  { %286 = vadd.xlane.f32.xlu1 %v281_v31  ;;  %v282_v32 = vmul.f32 %v278_v6, %v278_v6  ;;  %v279_v33 = vmul.f32 %v353_v18, %v275_v30 }
 0x2dc   :  { %288 = vadd.xlane.f32.xlu0 %v282_v32  ;;  %v283_v11 = vmul.f32 %v279_v33, %v279_v33 }
 0x2de   :  { %290 = vadd.xlane.f32.xlu1 %v283_v11 }
 0x365   :  { %v285_v34 = vpop.xlane.xlu0 %284 }
 0x366   :  { %v292_v35 = vmul.f32 0.03125, %v285_v34 }
 0x367   :  { %v287_v36 = vpop.xlane.xlu1 %286 }
 0x368   :  { %v296_v37 = vadd.f32 1e-05, %v292_v35  ;;  %v293_v38 = vmul.f32 0.03125, %v287_v36 }
 0x369   :  { %v289_v39 = vpop.xlane.xlu0 %288 }
 0x36a   :  { %421 = vrsqrt.f32 %v296_v37  ;;  %v297_v40 = vadd.f32 1e-05, %v293_v38  ;;  %v294_v41 = vmul.f32 0.03125, %v289_v39 }
 0x36b   :  { %v291_v42 = vpop.xlane.xlu1 %290 }
 0x36c   :  { %423 = vrsqrt.f32 %v297_v40  ;;  %v298_v43 = vadd.f32 1e-05, %v294_v41  ;;  %v295_v44 = vmul.f32 0.03125, %v291_v42 }
 0x36e   :  { %425 = vrsqrt.f32 %v298_v43  ;;  %v299_v45 = vadd.f32 1e-05, %v295_v44 }
 0x370   :  { %427 = vrsqrt.f32 %v299_v45 }
 0x374   :  { %v422_v46 = vpop.eup %421 }
 0x375   :  { %v304_v48 = vmul.f32 %v422_v46, %v276_v24 }
 0x376   :  { %v424_v49 = vpop.eup %423 }
 0x377   :  { %v305_v51 = vmul.f32 %v424_v49, %v277_v29  ;;  %v315_v52 = vmul.f32 %v365_v47, %v304_v48 }
 0x378   :  { %v426_v53 = vpop.eup %425 }
 0x379   :  { %v306_v54 = vmul.f32 %v426_v53, %v278_v6  ;;  %v316_v55 = vmul.f32 %v365_v47, %v305_v51  ;;  %v326_v56 = vadd.f32 %v366_v50, %v315_v52 }
 0x37a   :  { %v428_v57 = vpop.eup %427 }
 0x37b   :  { %v307_v58 = vmul.f32 %v428_v57, %v279_v33  ;;  %v317_v59 = vmul.f32 %v365_v47, %v306_v54  ;;  %v327_v60 = vadd.f32 %v366_v50, %v316_v55  ;;  %330 = vst [vmem:[#allocation7] sm:$0xff] %v326_v56 }
 0x37d   :  { %v318_v61 = vmul.f32 %v365_v47, %v307_v58  ;;  %v328_v62 = vadd.f32 %v366_v50, %v317_v59  ;;  %331 = vst [vmem:[#allocation7 + $0x8] sm:$0xff] %v327_v60 }
 0x37f   :  { %v329_v63 = vadd.f32 %v366_v50, %v318_v61  ;;  %332 = vst [vmem:[#allocation7 + $0x10] sm:$0xff] %v328_v62 }
 0x381   :  { %333 = vst [vmem:[#allocation7 + $0x18] sm:$0xff] %v329_v63 }
 0x382   :  { %484 = shalt.err (!%p481_p6)
}
 0x383   :  { %s485_s16 = scalar_lea.hbm %s619_s7, 512 }
 0x384   :  { %p486_p7 = scmp.ne.s32.totalorder %s619_s7, %s485_s16  ;;  %p489_p8 = scmp.lt.u32.totalorder %s485_s16, %s619_s7 }
 0x386   :  { %p491_p9 = pnand %p489_p8, %p486_p7 }
 0x388   :  { %494 = shalt.err (!%p491_p9)
}
 0x389   :  { %345 = dma.vmem_to_hbm [thread:$0]  %s340_s14, 512, %s619_s7, [#allocation4], %s502_s11, %s502_s11, %s503_s12  }
 0x38a   :  { %499 = dma.done.wait [#allocation4], 512  }
 0x38b   :  { %500 = vsyncadd [#allocation4], 4294966784 }
 0x38c   :  { %349 = vsyncpa [#allocation3], 1 }
 0x38d   :  { %350 = vsyncpa [#allocation6], 1 }
 0x38e   :  { %351 = vsyncpa [#allocation4], 1 }

</bundles_post_ra>
